<compile_context>
chip_gen: v7x
topology: tpu7x:2x2x1
jax: 0.10.0
libtpu: 0.0.40
codegen_flags: <defaults>
</compile_context>

<pallas_src>
import functools
import math

import jax
import jax.numpy as jnp
from jax.experimental import pallas as pl
from jax.experimental.pallas import tpu as pltpu


# ---------------------------------------------------------------------------
# Kernels
# ---------------------------------------------------------------------------

def _norm_act_store(y, g_ref, b_ref, o_ref, *, normalize, eps, negative_slope):
    """Shared epilogue: InstanceNorm (per-sample HW stats) + LeakyReLU + store.

    y : (Nb, HW, O) float32 conv output (a value; never round-trips HBM).
    """
    if normalize:
        hw = y.shape[1]
        inv_n = 1.0 / float(hw)
        # Stats taken immediately after the matmul (single pass over y).
        s = jnp.sum(y, axis=1, keepdims=True)                # (Nb, 1, O)
        ss = jnp.sum(y * y, axis=1, keepdims=True)           # (Nb, 1, O)
        mean = s * inv_n
        # Guard E[x^2]-E[x]^2 cancellation (review correctness concern).
        var = jnp.maximum(ss * inv_n - mean * mean, 0.0)
        scale = g_ref[...] * jax.lax.rsqrt(var + eps)        # (Nb, 1, O)
        shift = b_ref[...] - mean * scale                    # (Nb, 1, O)
    else:
        scale = shift = None

    # Elementwise tail in the output dtype (bf16 -> native VPU on v6e/v7x);
    # statistics above stay in f32.
    ct = jnp.float32 if o_ref.dtype == jnp.float32 else o_ref.dtype
    z = y.astype(ct)
    if normalize:
        z = z * scale.astype(ct) + shift.astype(ct)          # folded affine: 1 FMA
    z = jnp.where(z > 0, z, negative_slope * z)              # LeakyReLU(0.2)
    # NOTE: when O < 128 (first block only) this store is a masked vst; a
    # lane-dense flattened layout would need an in-kernel lane relayout.
    # TODO(synk): lane-dense output packing for O < 128 layers.
    o_ref[...] = z.astype(o_ref.dtype)


def _unet_down_concat_kernel(x_ref, w_ref, g_ref, b_ref, o_ref, *,
                             normalize, eps, negative_slope):
    """Conv as ONE (Nb*HW, 16*Cin) @ (16*Cin, O) matmul (small-Cin path)."""
    nb, hw, k = x_ref.shape
    n_out = o_ref.shape[-1]
    x2 = x_ref[...].reshape(nb * hw, k)
    y = jnp.dot(x2, w_ref[...], preferred_element_type=jnp.float32)
    _norm_act_store(y.reshape(nb, hw, n_out), g_ref, b_ref, o_ref,
                    normalize=normalize, eps=eps, negative_slope=negative_slope)


def _unet_down_s2d_kernel(x_ref, w_ref, g_ref, b_ref, o_ref, *,
                          oh, ow, normalize, eps, negative_slope):
    """Conv as FOUR (Nb*OH*OW, 4*Cin) @ (4*Cin, O) matmuls (no input dup)."""
    nb = x_ref.shape[0]
    c4 = x_ref.shape[-1]
    n_out = o_ref.shape[-1]
    x = x_ref[...]                                           # (Nb, OH+1, OW+1, 4C)
    y = jnp.zeros((nb * oh * ow, n_out), jnp.float32)
    for a in range(2):                                       # 4 big matmuls total
        for b in range(2):
            xs = x[:, a:a + oh, b:b + ow, :].reshape(nb * oh * ow, c4)
            y = y + jnp.dot(xs, w_ref[a, b], preferred_element_type=jnp.float32)
    _norm_act_store(y.reshape(nb, oh * ow, n_out), g_ref, b_ref, o_ref,
                    normalize=normalize, eps=eps, negative_slope=negative_slope)


# ---------------------------------------------------------------------------
# Parameters / weight layout (hoisted, done once)
# ---------------------------------------------------------------------------

def prepare_conv_weight(w_oihw):
    """(O, Cin, 4, 4) PyTorch conv weight -> (2, 2, 4*Cin, O) bf16 matrices,
    one (4*Cin, O) matrix per 2x2 stride phase (a, b); the (p, q, c) channel
    order matches the space-to-depth input layout."""
    n_out, c, kh, kw = w_oihw.shape
    assert kh == 4 and kw == 4
    w_t = jnp.transpose(w_oihw, (2, 3, 1, 0))                # (KH, KW, C, O)
    w_r = w_t.reshape(2, 2, 2, 2, c, n_out)                  # (a, p, b, q, c, o)
    w_s2d = jnp.transpose(w_r, (0, 2, 1, 3, 4, 5))           # (a, b, p, q, c, o)
    return w_s2d.reshape(2, 2, 4 * c, n_out).astype(jnp.bfloat16)


def init_params(key, in_size, out_size):
    w = 0.05 * jax.random.normal(key, (out_size, in_size, 4, 4), jnp.float32)
    w_s2d = prepare_conv_weight(w)
    return {
        "w_conv": w,                                         # reference layout
        "w_s2d": w_s2d,                                      # (2, 2, 4C, O) bf16
        "w_cat": w_s2d.reshape(16 * in_size, out_size),      # (16C, O) bf16
        "gamma": jnp.ones((1, 1, out_size), jnp.float32),    # InstanceNorm affine
        "beta": jnp.zeros((1, 1, out_size), jnp.float32),
    }


# ---------------------------------------------------------------------------
# Forward wrapper
# ---------------------------------------------------------------------------

def unet_down(params, x_nchw, *, normalize=True, dropout=0.0, eps=1e-5,
              negative_slope=0.2, out_dtype=jnp.bfloat16, conv_path="auto",
              nhwc_output=False, vmem_budget_bytes=24 << 20):
    """UNetDown forward.  Input is NCHW like PyTorch; output NCHW unless
    nhwc_output=True (lets an NHWC consumer skip the layout transpose)."""
    if dropout:
        # TODO(synk): Dropout(p>0) not emitted (module default dropout=0.0);
        # would use pltpu.prng_seed + pltpu.prng_random_bits for the keep mask.
        raise NotImplementedError("dropout > 0 not implemented (default is 0.0)")
    n, cin, h, w = x_nchw.shape
    assert h % 2 == 0 and w % 2 == 0, "k=4, s=2, p=1 block expects even H, W"
    oh, ow = h // 2, w // 2
    hw = oh * ow
    c4 = 4 * cin
    n_out = params["w_s2d"].shape[-1]

    if conv_path == "auto":
        conv_path = "concat" if cin <= 16 else "s2d"

    # Layout plumbing (wrapper side): NCHW -> NHWC -> pad 1 -> stride-2
    # space-to-depth: (N, OH+1, OW+1, 4*Cin), bf16 (native MXU input dtype).
    x_nhwc = jnp.transpose(x_nchw, (0, 2, 3, 1))
    xp = jnp.pad(x_nhwc, ((0, 0), (1, 1), (1, 1), (0, 0)))
    x_s2d = (xp.reshape(n, oh + 1, 2, ow + 1, 2, cin)
               .transpose(0, 1, 3, 2, 4, 5)
               .reshape(n, oh + 1, ow + 1, c4)
               .astype(jnp.bfloat16))

    if conv_path == "concat":
        # Concatenate the four 2x2 phase slabs along K: a single matmul with
        # K = 16*Cin (4x duplication of a small input, ~4x MXU contraction depth).
        parts = [x_s2d[:, a:a + oh, b:b + ow, :] for a in (0, 1) for b in (0, 1)]
        x_in = jnp.concatenate(parts, axis=-1).reshape(n, hw, 4 * c4)
        w_in = params["w_cat"]
        kern = functools.partial(_unet_down_concat_kernel, normalize=normalize,
                                 eps=eps, negative_slope=negative_slope)
        x_block_tail = (hw, 4 * c4)
        x_index_map = lambda i: (i, 0, 0)
        w_spec = pl.BlockSpec(w_in.shape, lambda i: (0, 0))
    else:
        # General path: no input duplication, 4 phase matmuls inside the kernel.
        x_in = x_s2d
        w_in = params["w_s2d"]
        kern = functools.partial(_unet_down_s2d_kernel, oh=oh, ow=ow,
                                 normalize=normalize, eps=eps,
                                 negative_slope=negative_slope)
        x_block_tail = (oh + 1, ow + 1, c4)
        x_index_map = lambda i: (i, 0, 0, 0)
        w_spec = pl.BlockSpec(w_in.shape, lambda i: (0, 0, 0, 0))

    # --- batch blocking: Nb samples per grid step, VMEM-budget aware --------
    in_bytes = 2 * math.prod(x_block_tail)                   # bf16 input / sample
    out_bytes = hw * n_out * jnp.dtype(out_dtype).itemsize   # output / sample
    y32_bytes = hw * n_out * 4                               # f32 conv value / sample
    w_bytes = 2 * w_in.size

    def per_step_bytes(nb):
        # double-buffered in/out blocks + the f32 pre-norm value
        return nb * (2 * in_bytes + 2 * out_bytes + y32_bytes)

    max_rows = 4096                                          # plenty of MXU M
    nb = n
    while nb > 1 and (n % nb != 0 or nb * hw > max_rows
                      or per_step_bytes(nb) + w_bytes > vmem_budget_bytes):
        nb -= 1
    # TODO(synk): layers whose per-sample tile alone blows the VMEM budget
    # (e.g. a 256x256 first layer on v7x) need an extra OH row-block grid axis
    # ("arbitrary") carrying per-sample sum/sum-sq in scratch.

    est = per_step_bytes(nb) + w_bytes + (1 << 20)
    vmem_limit = int(min(64 << 20, max(32 << 20, int(1.5 * est))))

    out = pl.pallas_call(
        kern,
        out_shape=jax.ShapeDtypeStruct((n, hw, n_out), out_dtype),
        grid=(n // nb,),
        in_specs=[
            pl.BlockSpec((nb,) + x_block_tail, x_index_map),
            w_spec,                                           # resident weights
            pl.BlockSpec((1, 1, n_out), lambda i: (0, 0, 0)),  # gamma (resident)
            pl.BlockSpec((1, 1, n_out), lambda i: (0, 0, 0)),  # beta  (resident)
        ],
        out_specs=pl.BlockSpec((nb, hw, n_out), lambda i: (i, 0, 0)),
        compiler_params=pltpu.CompilerParams(
            dimension_semantics=("parallel",),                # per-sample stats
            vmem_limit_bytes=vmem_limit),
    )(x_in, w_in, params["gamma"], params["beta"])

    out = out.reshape(n, oh, ow, n_out)                       # free (row-major)
    if nhwc_output:
        return out                                            # skip NCHW transpose
    return jnp.transpose(out, (0, 3, 1, 2))                   # NHWC -> NCHW


# ---------------------------------------------------------------------------
# Self-test
# ---------------------------------------------------------------------------

if __name__ == "__main__":
    key = jax.random.PRNGKey(0)
    k_x, k_w = jax.random.split(key)

    # Small shapes consistent with the module: batch=2, channels=4, spatial=16.
    n, cin, h, w, cout = 2, 4, 16, 16, 64
    x = jax.random.normal(k_x, (n, cin, h, w), jnp.float32)
    params = init_params(k_w, cin, cout)

    # f32 reference on the same bf16-rounded operands (the kernel's matmul runs
    # bf16 on the MXU with f32 accumulation).
    xr = x.astype(jnp.bfloat16).astype(jnp.float32)
    wr = params["w_conv"].astype(jnp.bfloat16).astype(jnp.float32)
    conv = jax.lax.conv_general_dilated(
        xr, wr, window_strides=(2, 2), padding=((1, 1), (1, 1)),
        dimension_numbers=("NCHW", "OIHW", "NCHW"),
        precision=jax.lax.Precision.HIGHEST)
    m = conv.mean(axis=(2, 3), keepdims=True)
    v = ((conv - m) ** 2).mean(axis=(2, 3), keepdims=True)
    g = params["gamma"].reshape(1, cout, 1, 1)
    b = params["beta"].reshape(1, cout, 1, 1)
    ref = (conv - m) / jnp.sqrt(v + 1e-5) * g + b
    ref = jnp.where(ref > 0, ref, 0.2 * ref)

    # Exercise both conv paths (f32 output: tight check) and the
    # bandwidth-optimized bf16 output (loose check: bf16 rounding of the tail).
    cases = [("concat", jnp.float32, 2e-3),
             ("s2d", jnp.float32, 2e-3),
             ("concat", jnp.bfloat16, 1e-1)]
    for path, dt, tol in cases:
        fwd = jax.jit(functools.partial(unet_down, normalize=True, dropout=0.0,
                                        conv_path=path, out_dtype=dt))
        out = jax.block_until_ready(fwd(params, x))
        assert out.shape == (n, cout, h // 2, w // 2), out.shape
        err = float(jnp.max(jnp.abs(out.astype(jnp.float32) - ref)))
        assert err < tol, f"{path}/{dt.__name__}: max abs error {err}"

    print("KERNEL_OK")
</pallas_src>

<mosaic_0001>
module attributes {stable_mosaic.version = 11 : i64} {
  func.func @_unet_down_concat_kernel(%arg0: i32, %arg1: memref<2x64x64xbf16, #tpu.memory_space<vmem>>, %arg2: memref<64x64xbf16, #tpu.memory_space<vmem>>, %arg3: memref<1x1x64xf32, #tpu.memory_space<vmem>>, %arg4: memref<1x1x64xf32, #tpu.memory_space<vmem>>, %arg5: memref<2x64x64xf32, #tpu.memory_space<vmem>>) attributes {dimension_semantics = [#tpu.dimension_semantics<parallel>], iteration_bounds = array<i64: 1>, scalar_prefetch = 0 : i64, scratch_operands = 0 : i64, tpu.core_type = #tpu.core_type<tc>, window_params = [{transform_indices = @transform_0, window_bounds = array<i64: 2, 64, 64>}, {pipeline_mode = #tpu.pipeline_mode<synchronous>, transform_indices = @transform_1, window_bounds = array<i64: 64, 64>}, {pipeline_mode = #tpu.pipeline_mode<synchronous>, transform_indices = @transform_2, window_bounds = array<i64: 1, 1, 64>}, {pipeline_mode = #tpu.pipeline_mode<synchronous>, transform_indices = @transform_3, window_bounds = array<i64: 1, 1, 64>}, {transform_indices = @transform_4, window_bounds = array<i64: 2, 64, 64>}]} {
    %c0 = arith.constant 0 : index
    %c0_0 = arith.constant 0 : index
    %c0_1 = arith.constant 0 : index
    %0 = vector.load %arg1[%c0, %c0_0, %c0_1] : memref<2x64x64xbf16, #tpu.memory_space<vmem>>, vector<2x64x64xbf16>
    %1 = vector.shape_cast %0 : vector<2x64x64xbf16> to vector<128x64xbf16>
    %c0_2 = arith.constant 0 : index
    %c0_3 = arith.constant 0 : index
    %2 = vector.load %arg2[%c0_2, %c0_3] : memref<64x64xbf16, #tpu.memory_space<vmem>>, vector<64x64xbf16>
    %cst = arith.constant dense<0.000000e+00> : vector<128x64xf32>
    %3 = tpu.matmul %1, %2, %cst {dimension_numbers = #tpu.dot_dimension_numbers<[1], [0], [0], [1], [0, 0, 1, 1], [], []>} : vector<128x64xbf16>, vector<64x64xbf16>, vector<128x64xf32> -> vector<128x64xf32>
    %4 = vector.shape_cast %3 : vector<128x64xf32> to vector<2x64x64xf32>
    %cst_4 = arith.constant dense<0.000000e+00> : vector<2x64xf32>
    %5 = vector.multi_reduction <add>, %4, %cst_4 [1] : vector<2x64x64xf32> to vector<2x64xf32>
    %6 = vector.shape_cast %5 : vector<2x64xf32> to vector<2x1x64xf32>
    %7 = arith.mulf %4, %4 : vector<2x64x64xf32>
    %cst_5 = arith.constant dense<0.000000e+00> : vector<2x64xf32>
    %8 = vector.multi_reduction <add>, %7, %cst_5 [1] : vector<2x64x64xf32> to vector<2x64xf32>
    %9 = vector.shape_cast %8 : vector<2x64xf32> to vector<2x1x64xf32>
    %cst_6 = arith.constant 1.562500e-02 : f32
    %10 = vector.broadcast %cst_6 : f32 to vector<2x1x64xf32>
    %11 = arith.mulf %6, %10 : vector<2x1x64xf32>
    %cst_7 = arith.constant 1.562500e-02 : f32
    %12 = vector.broadcast %cst_7 : f32 to vector<2x1x64xf32>
    %13 = arith.mulf %9, %12 : vector<2x1x64xf32>
    %14 = arith.mulf %11, %11 : vector<2x1x64xf32>
    %15 = arith.subf %13, %14 : vector<2x1x64xf32>
    %cst_8 = arith.constant 0.000000e+00 : f32
    %16 = vector.broadcast %cst_8 : f32 to vector<2x1x64xf32>
    %17 = arith.maximumf %15, %16 : vector<2x1x64xf32>
    %c0_9 = arith.constant 0 : index
    %c0_10 = arith.constant 0 : index
    %c0_11 = arith.constant 0 : index
    %18 = vector.load %arg3[%c0_9, %c0_10, %c0_11] : memref<1x1x64xf32, #tpu.memory_space<vmem>>, vector<1x1x64xf32>
    %cst_12 = arith.constant 9.99999974E-6 : f32
    %19 = vector.broadcast %cst_12 : f32 to vector<2x1x64xf32>
    %20 = arith.addf %17, %19 : vector<2x1x64xf32>
    %21 = math.rsqrt %20 : vector<2x1x64xf32>
    %22 = vector.broadcast %18 : vector<1x1x64xf32> to vector<2x1x64xf32>
    %23 = arith.mulf %22, %21 : vector<2x1x64xf32>
    %c0_13 = arith.constant 0 : index
    %c0_14 = arith.constant 0 : index
    %c0_15 = arith.constant 0 : index
    %24 = vector.load %arg4[%c0_13, %c0_14, %c0_15] : memref<1x1x64xf32, #tpu.memory_space<vmem>>, vector<1x1x64xf32>
    %25 = arith.mulf %11, %23 : vector<2x1x64xf32>
    %26 = vector.broadcast %24 : vector<1x1x64xf32> to vector<2x1x64xf32>
    %27 = arith.subf %26, %25 : vector<2x1x64xf32>
    %28 = vector.broadcast %23 : vector<2x1x64xf32> to vector<2x64x64xf32>
    %29 = arith.mulf %4, %28 : vector<2x64x64xf32>
    %30 = vector.broadcast %27 : vector<2x1x64xf32> to vector<2x64x64xf32>
    %31 = arith.addf %29, %30 : vector<2x64x64xf32>
    %cst_16 = arith.constant 0.000000e+00 : f32
    %32 = vector.broadcast %cst_16 : f32 to vector<2x64x64xf32>
    %33 = arith.cmpf ogt, %31, %32 : vector<2x64x64xf32>
    %cst_17 = arith.constant 2.000000e-01 : f32
    %34 = vector.broadcast %cst_17 : f32 to vector<2x64x64xf32>
    %35 = arith.mulf %34, %31 : vector<2x64x64xf32>
    %36 = arith.select %33, %31, %35 : vector<2x64x64xi1>, vector<2x64x64xf32>
    %c0_18 = arith.constant 0 : index
    %c0_19 = arith.constant 0 : index
    %c0_20 = arith.constant 0 : index
    %37 = vector.load %arg5[%c0_18, %c0_19, %c0_20] : memref<2x64x64xf32, #tpu.memory_space<vmem>>, vector<2x64x64xf32>
    tpu.vector_store %arg5[%c0_18, %c0_19, %c0_20], %36 {strides = array<i32>} : memref<2x64x64xf32, #tpu.memory_space<vmem>>, vector<2x64x64xf32>,
    return
  }
  func.func @transform_0(%arg0: i32) -> (i32, i32, i32) {
    %c0_i32 = arith.constant 0 : i32
    %c0_i32_0 = arith.constant 0 : i32
    %c0_i32_1 = arith.constant 0 : i32
    return %arg0, %c0_i32, %c0_i32_0 : i32, i32, i32
  }
  func.func @transform_1(%arg0: i32) -> (i32, i32) {
    %c0_i32 = arith.constant 0 : i32
    %c0_i32_0 = arith.constant 0 : i32
    %c0_i32_1 = arith.constant 0 : i32
    return %c0_i32, %c0_i32_0 : i32, i32
  }
  func.func @transform_2(%arg0: i32) -> (i32, i32, i32) {
    %c0_i32 = arith.constant 0 : i32
    %c0_i32_0 = arith.constant 0 : i32
    %c0_i32_1 = arith.constant 0 : i32
    %c0_i32_2 = arith.constant 0 : i32
    return %c0_i32, %c0_i32_0, %c0_i32_1 : i32, i32, i32
  }
  func.func @transform_3(%arg0: i32) -> (i32, i32, i32) {
    %c0_i32 = arith.constant 0 : i32
    %c0_i32_0 = arith.constant 0 : i32
    %c0_i32_1 = arith.constant 0 : i32
    %c0_i32_2 = arith.constant 0 : i32
    return %c0_i32, %c0_i32_0, %c0_i32_1 : i32, i32, i32
  }
  func.func @transform_4(%arg0: i32) -> (i32, i32, i32) {
    %c0_i32 = arith.constant 0 : i32
    %c0_i32_0 = arith.constant 0 : i32
    %c0_i32_1 = arith.constant 0 : i32
    return %arg0, %c0_i32, %c0_i32_0 : i32, i32, i32
  }
}

</mosaic_0001>

<bundles_post_ra>
// kernel: unet_down.1
= control target key start
LH: loop header
LB: loop body
LE: loop exit
PB: predicated region body
PF: predicated region fallthrough
CT: control target
= control target key end

     0   :  { %vm107_vm0 = vcmask 523264   ;;  %s861_s0 = inlined_call_operand.vmem [shape: bf16[2,64,64], index: 0, kind: input, shape index: {}]   ;;  %s862_s1 = inlined_call_operand.vmem [shape: bf16[64,64], index: 1, kind: input, shape index: {}]   ;;  %s863_s2 = inlined_call_operand.vmem [shape: f32[1,1,64], index: 2, kind: input, shape index: {}]   ;;  %s864_s3 = inlined_call_operand.vmem [shape: f32[1,1,64], index: 3, kind: input, shape index: {}]   ;;  %s865_s4 = inlined_call_operand.hbm [shape: f32[2,64,64], index: 4, kind: output, shape index: {}]  }
   0x1   :  { %v554_v0 = vld [vmem:[%s862_s1] sm:$0xff]   ;;  %v555_v1 = vld [vmem:[%s862_s1 + $0x8] sm:$0xff]   ;;  %v556_v2 = vld [vmem:[%s862_s1 + $0x10] sm:$0xff]  }
   0x2   :  { %519 = vmatprep.subr.bf16.mxu0 %v554_v0  ;;  %543 = vmatprep.subr.bf16.mxu1 %v554_v0  ;;  %v558_v3 = vld [vmem:[%s861_s0] sm:$0xff]   ;;  %v557_v5 = vld [vmem:[%s862_s1 + $0x18] sm:$0xff]  }
   0x3   :  { %520 = vmatpush3.bf16.msra.mxu0 %v554_v0  ;;  %547 = vmatpush3.bf16.msra.mxu1 %v554_v0  ;;  %v559_v4 = vld [vmem:[%s861_s0 + $0x20] sm:$0xff]  }
   0x4   :  { %521 = vmatprep.subr.bf16.mxu0 %v555_v1  ;;  %544 = vmatprep.subr.bf16.mxu1 %v555_v1 }
   0x5   :  { %527 = vmatprep.mubr.msk.bf16.mxu0 %vm107_vm0, %v558_v3  ;;  %535 = vmatprep.mubr.msk.bf16.mxu1 %vm107_vm0, %v559_v4 }
   0x7   :  { %522 = vmatpush3.bf16.msra.mxu0 %v555_v1  ;;  %548 = vmatpush3.bf16.msra.mxu1 %v555_v1 }
   0x8   :  { %523 = vmatprep.subr.bf16.mxu0 %v556_v2  ;;  %545 = vmatprep.subr.bf16.mxu1 %v556_v2 }
   0xb   :  { %524 = vmatpush3.bf16.msra.mxu0 %v556_v2  ;;  %549 = vmatpush3.bf16.msra.mxu1 %v556_v2 }
   0xc   :  { %525 = vmatprep.subr.bf16.mxu0 %v557_v5  ;;  %546 = vmatprep.subr.bf16.mxu1 %v557_v5 }
   0xd   :  { %9 = vsyncpa [#allocation3], 0  ;;  %v560_v6 = vld [vmem:[%s861_s0 + $0x8] sm:$0xff]   ;;  %v562_v8 = vld [vmem:[%s861_s0 + $0x10] sm:$0xff]  }
   0xe   :  { %v561_v7 = vld [vmem:[%s861_s0 + $0x28] sm:$0xff]   ;;  %v563_v9 = vld [vmem:[%s861_s0 + $0x30] sm:$0xff]   ;;  %v564_v10 = vld [vmem:[%s861_s0 + $0x18] sm:$0xff]  }
   0xf   :  { %526 = vmatpush3.bf16.msra.mxu0 %v557_v5  ;;  %550 = vmatpush3.bf16.msra.mxu1 %v557_v5  ;;  %v565_v11 = vld [vmem:[%s861_s0 + $0x38] sm:$0xff]  }
  0x12   :  { %528 = vmatmul.mubr.msk.bf16.vlgmr.msra.gmra.mrb[0].mxu0 %vm107_vm0, %v560_v6  ;;  %536 = vmatmul.mubr.msk.bf16.vlgmr.msra.gmra.mrb[0].mxu1 %vm107_vm0, %v561_v7 }
  0x13   :  { %531 = vmatprep.mubr.msk.bf16.mxu0 %vm107_vm0, %v562_v8  ;;  %539 = vmatprep.mubr.msk.bf16.mxu1 %vm107_vm0, %v563_v9 }
  0x1a   :  { %532 = vmatmul.mubr.msk.bf16.gmra.mrb[4].mxu0 %vm107_vm0, %v564_v10  ;;  %540 = vmatmul.mubr.msk.bf16.gmra.mrb[4].mxu1 %vm107_vm0, %v565_v11 }
  0xe5   :  { %v666_v12 = vpop.f32.mrb[0].mxu0  ;;  %v668_v13 = vpop.f32.mrb[0].mxu1 }
  0xe6   :  { %v670_v14 = vpop.f32.mrb[1].mxu0  ;;  %v672_v15 = vpop.f32.mrb[1].mxu1  ;;  %v232_v18 = vsel %vm107_vm0, %v666_v12, 0.0  ;;  %v273_v23 = vmul.f32 %v666_v12, %v666_v12  ;;  %v253_v24 = vsel %vm107_vm0, %v668_v13, 0.0  ;;  %v281_v25 = vmul.f32 %v668_v13, %v668_v13 }
  0xe7   :  { %v674_v16 = vpop.f32.mrb[2].mxu0  ;;  %v676_v17 = vpop.f32.mrb[2].mxu1  ;;  %v271_v19 = vmul.f32 %v670_v14, %v670_v14  ;;  %v279_v20 = vmul.f32 %v672_v15, %v672_v15  ;;  %v229_v26 = vsel %vm107_vm0, %v670_v14, 0.0  ;;  %v250_v27 = vsel %vm107_vm0, %v672_v15, 0.0 }
  0xe8   :  { %v684_v21 = vpop.f32.mrb[3].mxu0  ;;  %v686_v22 = vpop.f32.mrb[3].mxu1  ;;  %v274_v31 = vmul.f32 %v674_v16, %v674_v16  ;;  %v282_v37 = vmul.f32 %v676_v17, %v676_v17  ;;  %v290_v45 = vsel %vm107_vm0, %v273_v23, 0.0  ;;  %v311_v46 = vsel %vm107_vm0, %v281_v25, 0.0 }
  0xe9   :  { %v230_v28 = vsel %vm107_vm0, %v684_v21, 0.0  ;;  %v272_v29 = vmul.f32 %v684_v21, %v684_v21  ;;  %v251_v30 = vsel %vm107_vm0, %v686_v22, 0.0  ;;  %v280_v34 = vmul.f32 %v686_v22, %v686_v22 }
  0xea   :  { %v231_v32 = vadd.f32 %v230_v28, %v229_v26  ;;  %v252_v33 = vadd.f32 %v251_v30, %v250_v27  ;;  %v287_v35 = vsel %vm107_vm0, %v271_v19, 0.0  ;;  %v308_v36 = vsel %vm107_vm0, %v279_v20, 0.0 }
  0xeb   :  { %v288_v38 = vsel %vm107_vm0, %v272_v29, 0.0  ;;  %v309_v42 = vsel %vm107_vm0, %v280_v34, 0.0  ;;  %v234_v47 = vsel %vm107_vm0, %v674_v16, 0.0  ;;  %v255_v51 = vsel %vm107_vm0, %v676_v17, 0.0 }
  0xec   :  { %v233_v39 = vadd.f32 %v232_v18, %v231_v32  ;;  %v289_v40 = vadd.f32 %v288_v38, %v287_v35  ;;  %v254_v41 = vadd.f32 %v253_v24, %v252_v33  ;;  %v310_v48 = vadd.f32 %v309_v42, %v308_v36 }
  0xed   :  { %v714_v43 = vpop.f32.mrb[4].mxu0  ;;  %v716_v44 = vpop.f32.mrb[4].mxu1  ;;  %v292_v57 = vsel %vm107_vm0, %v274_v31, 0.0  ;;  %v313_v63 = vsel %vm107_vm0, %v282_v37, 0.0 }
  0xee   :  { %v722_v49 = vpop.f32.mrb[5].mxu0  ;;  %v724_v50 = vpop.f32.mrb[5].mxu1  ;;  %v291_v52 = vadd.f32 %v290_v45, %v289_v40  ;;  %v235_v53 = vadd.f32 %v234_v47, %v233_v39  ;;  %v312_v58 = vadd.f32 %v311_v46, %v310_v48  ;;  %v256_v60 = vadd.f32 %v255_v51, %v254_v41 }
  0xef   :  { %v236_v54 = vsel %vm107_vm0, %v722_v49, 0.0  ;;  %v730_v55 = vpop.f32.mrb[6].mxu0  ;;  %v732_v56 = vpop.f32.mrb[6].mxu1  ;;  %v275_v59 = vmul.f32 %v722_v49, %v722_v49  ;;  %v257_v2 = vsel %vm107_vm0, %v724_v50, 0.0  ;;  %v283_v5 = vmul.f32 %v724_v50, %v724_v50 }
  0xf0   :  { %v737_v61 = vpop.f32.mrb[7].mxu0  ;;  %v739_v62 = vpop.f32.mrb[7].mxu1  ;;  %v237_v0 = vadd.f32 %v236_v54, %v235_v53  ;;  %v293_v1 = vadd.f32 %v292_v57, %v291_v52  ;;  %v258_v4 = vadd.f32 %v257_v2, %v256_v60  ;;  %v314_v6 = vadd.f32 %v313_v63, %v312_v58 }
  0xf1   :  { %v294_v3 = vsel %vm107_vm0, %v275_v59, 0.0  ;;  %v277_v7 = vmul.f32 %v714_v43, %v714_v43  ;;  %v240_v9 = vsel %vm107_vm0, %v714_v43, 0.0  ;;  %v315_v10 = vsel %vm107_vm0, %v283_v5, 0.0 }
  0xf2   :  { %v295_v8 = vadd.f32 %v294_v3, %v293_v1  ;;  %v238_v11 = vsel %vm107_vm0, %v737_v61, 0.0  ;;  %v276_v18 = vmul.f32 %v737_v61, %v737_v61  ;;  %v285_v19 = vmul.f32 %v716_v44, %v716_v44 }
  0xf3   :  { %v316_v20 = vadd.f32 %v315_v10, %v314_v6  ;;  %v239_v23 = vadd.f32 %v238_v11, %v237_v0  ;;  %v259_v24 = vsel %vm107_vm0, %v739_v62, 0.0  ;;  %v278_v25 = vmul.f32 %v730_v55, %v730_v55 }
  0xf4   :  { %v296_v26 = vsel %vm107_vm0, %v276_v18, 0.0  ;;  %v260_v27 = vadd.f32 %v259_v24, %v258_v4  ;;  %v284_v28 = vmul.f32 %v739_v62, %v739_v62  ;;  %v298_v29 = vsel %vm107_vm0, %v277_v7, 0.0 }
  0xf5   :  { %v261_v30 = vsel %vm107_vm0, %v716_v44, 0.0  ;;  %v241_v31 = vadd.f32 %v240_v9, %v239_v23  ;;  %v297_v32 = vadd.f32 %v296_v26, %v295_v8  ;;  %v242_v33 = vsel %vm107_vm0, %v730_v55, 0.0 }
  0xf6   :  { %v286_v34 = vmul.f32 %v732_v56, %v732_v56  ;;  %v262_v35 = vadd.f32 %v261_v30, %v260_v27  ;;  %v317_v36 = vsel %vm107_vm0, %v284_v28, 0.0  ;;  %v263_v37 = vsel %vm107_vm0, %v732_v56, 0.0 }
  0xf7   :  { %v243_v38 = vadd.f32 %v242_v33, %v241_v31  ;;  %v299_v39 = vadd.f32 %v298_v29, %v297_v32  ;;  %v318_v40 = vadd.f32 %v317_v36, %v316_v20  ;;  %v319_v41 = vsel %vm107_vm0, %v285_v19, 0.0 }
  0xf8   :  { %v300_v42 = vsel %vm107_vm0, %v278_v25, 0.0  ;;  %v264_v45 = vadd.f32 %v263_v37, %v262_v35  ;;  %v321_v51 = vsel %vm107_vm0, %v286_v34, 0.0  ;;  %v353_v36 = vlaneseq }
  0xf9   :  { %v244_v46 = vrot.slane %v243_v38, 4  ;;  %v301_v47 = vadd.f32 %v300_v42, %v299_v39  ;;  %v320_v48 = vadd.f32 %v319_v41, %v318_v40 }
  0xfa   :  { %v265_v52 = vrot.slane %v264_v45, 4  ;;  %v354_v37 = vshrl.u32 %v353_v36, 7 }
  0xfb   :  { %v245_v53 = vadd.f32 %v244_v46, %v243_v38  ;;  %v302_v54 = vrot.slane %v301_v47, 4  ;;  %v322_v57 = vadd.f32 %v321_v51, %v320_v48  ;;  %v339_v38 = vld [vmem:[%s863_s2] sm:$0x1]  ;;  %s594_s2 = smov [#allocation2]  }
  0xfc   :  { %v266_v58 = vadd.f32 %v265_v52, %v264_v45  ;;  %v781_v39 = vsub.s32 0, %v354_v37  ;;  %v786_v45 = vld [vmem:[%s864_s3] sm:$0x1]  ;;  %s476_s3 = sshll.u32 %s594_s2, 4  ;;  %s828_s3 = int_to_ptr.vmem [resolvable:$true] %s476_s3 }
  0xfd   :  { %v246_v59 = vrot.slane %v245_v53, 2  ;;  %v303_v60 = vadd.f32 %v302_v54, %v301_v47  ;;  %v323_v63 = vrot.slane %v322_v57, 4  ;;  %s570_s15 = scalar_lea.vmem %s828_s3, 2048  ;;  %p575_p1 = scmp.lt.s32.totalorder %s828_s3, %s828_s3 }
  0xfe   :  { %v267_v0 = vrot.slane %v266_v58, 2  ;;  %p571_p0 = scmp.ne.s32.totalorder %s828_s3, %s570_s15  ;;  %p576_p2 = scmp.lt.s32.totalorder %s570_s15, %s570_s15 }
  0xff   :  { %v247_v1 = vadd.f32 %v246_v59, %v245_v53  ;;  %v304_v2 = vrot.slane %v303_v60, 2  ;;  %v324_v3 = vadd.f32 %v323_v63, %v322_v57 }
 0x100   :  { %v268_v4 = vadd.f32 %v267_v0, %v266_v58  ;;  %p577_p3 = por %p576_p2, %p575_p1 }
 0x101   :  { %v248_v5 = vrot.slane %v247_v1, 1  ;;  %v305_v6 = vadd.f32 %v304_v2, %v303_v60  ;;  %v325_v7 = vrot.slane %v324_v3, 2 }
 0x102   :  { %v269_v8 = vrot.slane %v268_v4, 1  ;;  %p578_p4 = pnand %p577_p3, %p571_p0 }
 0x103   :  { %v249_v9 = vadd.f32 %v248_v5, %v247_v1  ;;  %v306_v10 = vrot.slane %v305_v6, 1  ;;  %v326_v11 = vadd.f32 %v325_v7, %v324_v3 }
 0x104   :  { %v270_v18 = vadd.f32 %v269_v8, %v268_v4 }
 0x105   :  { %v307_v19 = vadd.f32 %v306_v10, %v305_v6  ;;  %v329_v20 = vmul.f32 0.015625, %v249_v9  ;;  %v327_v23 = vrot.slane %v326_v11, 1 }
 0x106   :  { %v330_v24 = vmul.f32 0.015625, %v270_v18 }
 0x107   :  { %v331_v25 = vmul.f32 0.015625, %v307_v19  ;;  %v333_v26 = vmul.f32 %v329_v20, %v329_v20  ;;  %v328_v27 = vadd.f32 %v327_v23, %v326_v11 }
 0x108   :  { %v334_v28 = vmul.f32 %v330_v24, %v330_v24 }
 0x109   :  { %v335_v29 = vsub.f32 %v331_v25, %v333_v26  ;;  %v332_v30 = vmul.f32 0.015625, %v328_v27 }
 0x10b   :  { %v337_v31 = vmax.f32 %v335_v29, 0.0  ;;  %v336_v32 = vsub.f32 %v332_v30, %v334_v28 }
 0x10d   :  { %v340_v33 = vadd.f32 1e-05, %v337_v31  ;;  %v338_v34 = vmax.f32 %v336_v32, 0.0 }
 0x10f   :  { %566 = vrsqrt.f32 %v340_v33  ;;  %v341_v35 = vadd.f32 1e-05, %v338_v34 }
 0x111   :  { %568 = vrsqrt.f32 %v341_v35 }
 0x119   :  { %v567_v40 = vpop.eup %566 }
 0x11a   :  { %v344_v41 = vmul.f32 %v567_v40, %v339_v38 }
 0x11b   :  { %v569_v42 = vpop.eup %568 }
 0x11c   :  { %v347_v46 = vmul.f32 %v344_v41, %v329_v20  ;;  %v356_v47 = vrot.slane %v344_v41, %v781_v39  ;;  %v345_v48 = vmul.f32 %v569_v42, %v339_v38 }
 0x11e   :  { %v349_v51 = vsub.f32 %v786_v45, %v347_v46  ;;  %v363_v52 = vmul.f32 %v356_v47, %v670_v14  ;;  %v364_v53 = vmul.f32 %v356_v47, %v684_v21  ;;  %v365_v54 = vmul.f32 %v666_v12, %v356_v47 }
 0x11f   :  { %v366_v57 = vmul.f32 %v674_v16, %v356_v47  ;;  %v367_v58 = vmul.f32 %v356_v47, %v722_v49  ;;  %v368_v59 = vmul.f32 %v356_v47, %v737_v61  ;;  %v369_v60 = vmul.f32 %v714_v43, %v356_v47 }
 0x120   :  { %v370_v63 = vmul.f32 %v730_v55, %v356_v47  ;;  %v384_v0 = vrot.slane %v349_v51, %v781_v39  ;;  %v348_v1 = vmul.f32 %v345_v48, %v330_v24  ;;  %v360_v2 = vrot.slane %v345_v48, %v781_v39 }
 0x122   :  { %v391_v14 = vadd.f32 %v384_v0, %v363_v52  ;;  %v392_v3 = vadd.f32 %v384_v0, %v364_v53  ;;  %v393_v21 = vadd.f32 %v384_v0, %v365_v54  ;;  %v394_v4 = vadd.f32 %v384_v0, %v366_v57 }
 0x123   :  { %v395_v12 = vadd.f32 %v384_v0, %v367_v58  ;;  %v396_v5 = vadd.f32 %v384_v0, %v368_v59  ;;  %v397_v16 = vadd.f32 %v384_v0, %v369_v60  ;;  %v398_v6 = vadd.f32 %v384_v0, %v370_v63 }
 0x124   :  { %vm407_vm1 = vcmp.gt.f32.partialorder %v391_v14, 0.0  ;;  %vm408_vm2 = vcmp.gt.f32.partialorder %v392_v3, 0.0  ;;  %vm409_vm3 = vcmp.gt.f32.partialorder %v393_v21, 0.0  ;;  %vm410_vm4 = vcmp.gt.f32.partialorder %v394_v4, 0.0 }
 0x125   :  { %vm411_vm5 = vcmp.gt.f32.partialorder %v395_v12, 0.0  ;;  %vm412_vm6 = vcmp.gt.f32.partialorder %v396_v5, 0.0  ;;  %vm413_vm7 = vcmp.gt.f32.partialorder %v397_v16, 0.0  ;;  %vm414_vm8 = vcmp.gt.f32.partialorder %v398_v6, 0.0 }
 0x126   :  { %v423_v43 = vmul.f32 0.2, %v391_v14  ;;  %v424_v49 = vmul.f32 0.2, %v392_v3  ;;  %v425_v55 = vmul.f32 0.2, %v393_v21  ;;  %v350_v61 = vsub.f32 %v786_v45, %v348_v1 }
 0x127   :  { %v426_v7 = vmul.f32 0.2, %v394_v4  ;;  %v427_v8 = vmul.f32 0.2, %v395_v12  ;;  %v428_v9 = vmul.f32 0.2, %v396_v5  ;;  %v371_v10 = vmul.f32 %v360_v2, %v672_v15 }
 0x128   :  { %v429_v11 = vmul.f32 0.2, %v397_v16  ;;  %v430_v18 = vmul.f32 0.2, %v398_v6  ;;  %v439_v19 = vsel %vm407_vm1, %v391_v14, %v423_v43  ;;  %v440_v20 = vsel %vm408_vm2, %v392_v3, %v424_v49 }
 0x129   :  { %v441_v23 = vsel %vm409_vm3, %v393_v21, %v425_v55  ;;  %v442_v24 = vsel %vm410_vm4, %v394_v4, %v426_v7  ;;  %v443_v25 = vsel %vm411_vm5, %v395_v12, %v427_v8  ;;  %v444_v26 = vsel %vm412_vm6, %v396_v5, %v428_v9  ;;  %455 = vst.msk [vmem:[#allocation2] sm:$0xff] %vm107_vm0, %v439_v19 }
 0x12a   :  { %456 = vst.msk [vmem:[#allocation2 + $0x8] sm:$0xff] %vm107_vm0, %v440_v20  ;;  %v445_v15 = vsel %vm413_vm7, %v397_v16, %v429_v11  ;;  %v446_v27 = vsel %vm414_vm8, %v398_v6, %v430_v18  ;;  %457 = vst.msk [vmem:[#allocation2 + $0x10] sm:$0xff] %vm107_vm0, %v441_v23  ;;  %v372_v28 = vmul.f32 %v360_v2, %v686_v22 }
 0x12b   :  { %458 = vst.msk [vmem:[#allocation2 + $0x18] sm:$0xff] %vm107_vm0, %v442_v24  ;;  %459 = vst.msk [vmem:[#allocation2 + $0x20] sm:$0xff] %vm107_vm0, %v443_v25  ;;  %v373_v29 = vmul.f32 %v668_v13, %v360_v2  ;;  %v374_v30 = vmul.f32 %v676_v17, %v360_v2  ;;  %v375_v31 = vmul.f32 %v360_v2, %v724_v50 }
 0x12c   :  { %460 = vst.msk [vmem:[#allocation2 + $0x28] sm:$0xff] %vm107_vm0, %v444_v26  ;;  %461 = vst.msk [vmem:[#allocation2 + $0x30] sm:$0xff] %vm107_vm0, %v445_v15  ;;  %v376_v32 = vmul.f32 %v360_v2, %v739_v62  ;;  %v377_v33 = vmul.f32 %v716_v44, %v360_v2  ;;  %v378_v34 = vmul.f32 %v732_v56, %v360_v2 }
 0x12d   :  { %462 = vst.msk [vmem:[#allocation2 + $0x38] sm:$0xff] %vm107_vm0, %v446_v27  ;;  %v388_v35 = vrot.slane %v350_v61, %v781_v39 }
 0x12f   :  { %v399_v36 = vadd.f32 %v388_v35, %v371_v10  ;;  %v400_v22 = vadd.f32 %v388_v35, %v372_v28  ;;  %v401_v37 = vadd.f32 %v388_v35, %v373_v29  ;;  %v402_v13 = vadd.f32 %v388_v35, %v374_v30 }
 0x130   :  { %v403_v38 = vadd.f32 %v388_v35, %v375_v31  ;;  %v404_v40 = vadd.f32 %v388_v35, %v376_v32  ;;  %v405_v41 = vadd.f32 %v388_v35, %v377_v33  ;;  %v406_v42 = vadd.f32 %v388_v35, %v378_v34 }
 0x131   :  { %vm415_vm9 = vcmp.gt.f32.partialorder %v399_v36, 0.0  ;;  %vm416_vm10 = vcmp.gt.f32.partialorder %v400_v22, 0.0  ;;  %vm417_vm11 = vcmp.gt.f32.partialorder %v401_v37, 0.0  ;;  %vm418_vm12 = vcmp.gt.f32.partialorder %v402_v13, 0.0 }
 0x132   :  { %vm419_vm13 = vcmp.gt.f32.partialorder %v403_v38, 0.0  ;;  %vm420_vm14 = vcmp.gt.f32.partialorder %v404_v40, 0.0  ;;  %vm421_vm15 = vcmp.gt.f32.partialorder %v405_v41, 0.0  ;;  %vm422_vm1 = vcmp.gt.f32.partialorder %v406_v42, 0.0 }
 0x133   :  { %v431_v17 = vmul.f32 0.2, %v399_v36  ;;  %v432_v44 = vmul.f32 0.2, %v400_v22  ;;  %v433_v50 = vmul.f32 0.2, %v401_v37 }
 0x134   :  { %v434_v56 = vmul.f32 0.2, %v402_v13  ;;  %v435_v62 = vmul.f32 0.2, %v403_v38  ;;  %v436_v39 = vmul.f32 0.2, %v404_v40 }
 0x135   :  { %v437_v45 = vmul.f32 0.2, %v405_v41  ;;  %v438_v46 = vmul.f32 0.2, %v406_v42  ;;  %v447_v47 = vsel %vm415_vm9, %v399_v36, %v431_v17  ;;  %v448_v48 = vsel %vm416_vm10, %v400_v22, %v432_v44 }
 0x136   :  { %v449_v51 = vsel %vm417_vm11, %v401_v37, %v433_v50  ;;  %v450_v52 = vsel %vm418_vm12, %v402_v13, %v434_v56  ;;  %v451_v53 = vsel %vm419_vm13, %v403_v38, %v435_v62  ;;  %v452_v54 = vsel %vm420_vm14, %v404_v40, %v436_v39  ;;  %463 = vst.msk [vmem:[#allocation2 + $0x40] sm:$0xff] %vm107_vm0, %v447_v47 }
 0x137   :  { %464 = vst.msk [vmem:[#allocation2 + $0x48] sm:$0xff] %vm107_vm0, %v448_v48  ;;  %v453_v57 = vsel %vm421_vm15, %v405_v41, %v437_v45  ;;  %v454_v58 = vsel %vm422_vm1, %v406_v42, %v438_v46  ;;  %465 = vst.msk [vmem:[#allocation2 + $0x50] sm:$0xff] %vm107_vm0, %v449_v51 }
 0x138   :  { %466 = vst.msk [vmem:[#allocation2 + $0x58] sm:$0xff] %vm107_vm0, %v450_v52  ;;  %467 = vst.msk [vmem:[#allocation2 + $0x60] sm:$0xff] %vm107_vm0, %v451_v53 }
 0x139   :  { %468 = vst.msk [vmem:[#allocation2 + $0x68] sm:$0xff] %vm107_vm0, %v452_v54  ;;  %469 = vst.msk [vmem:[#allocation2 + $0x70] sm:$0xff] %vm107_vm0, %v453_v57 }
 0x13a   :  { %470 = vst.msk [vmem:[#allocation2 + $0x78] sm:$0xff] %vm107_vm0, %v454_v58 }
 0x13b   :  { %581 = shalt.err (!%p578_p4)
}
 0x13c   :  { %s582_s18 = scalar_lea.hbm %s865_s4, 2048 }
 0x13d   :  { %p583_p5 = scmp.ne.s32.totalorder %s865_s4, %s582_s18  ;;  %p586_p6 = scmp.lt.u32.totalorder %s582_s18, %s865_s4 }
 0x13f   :  { %p588_p7 = pnand %p586_p6, %p583_p5 }
 0x141   :  { %591 = shalt.err (!%p588_p7)
}
 0x142   :  { %s595_s23 = smov 128   ;;  %s596_s24 = smov 8  }
 0x143   :  { %482 = dma.vmem_to_hbm [thread:$0]  %s828_s3, 2048, %s865_s4, [#allocation3], %s595_s23, %s595_s23, %s596_s24  }
 0x144   :  { %592 = dma.done.wait [#allocation3], 2048  }
 0x145   :  { %593 = vsyncadd [#allocation3], 4294965248 }
 0x146   :  { %486 = vsyncpa [#allocation3], 1 }

</bundles_post_ra>
